<compile_context>
chip_gen: v6e
topology: v6e:2x2x1
jax: 0.10.0
libtpu: 0.0.40
codegen_flags: <defaults>
</compile_context>

<pallas_src>
import jax
import jax.numpy as jnp
import numpy as np
from jax import lax
from jax.experimental import pallas as pl
from jax.experimental.pallas import tpu as pltpu

EPS = 1e-5
NEG_SLOPE = 0.2
LANE = 128


def _round_up(x, m):
    return ((x + m - 1) // m) * m


def _pick_row_tile(m, tm_max):
    """Row tile: multiple of 8, capped at tm_max, >=2 grid blocks when possible."""
    tm = min(tm_max, _round_up(m, 8))
    if m > 8 and _round_up(m, 8) <= tm_max:
        tm = max(8, _round_up((m + 1) // 2, 8))
    return tm


# --------------------------------------------------------------------------
# Pallas kernels
# --------------------------------------------------------------------------
def _mm_kernel(a_ref, b_ref, o_ref):
    o_ref[...] = jnp.dot(a_ref[...], b_ref[...], preferred_element_type=jnp.float32)


def _mm_lrelu_kernel(a_ref, b_ref, o_ref):
    # Conv matmul with fused LeakyReLU(0.2) epilogue (VPU work rides along MXU).
    y = jnp.dot(a_ref[...], b_ref[...], preferred_element_type=jnp.float32)
    o_ref[...] = jnp.where(y >= 0.0, y, NEG_SLOPE * y)


def _mm_stats_kernel(a_ref, b_ref, o_ref, s1_ref, s2_ref):
    # Conv matmul + per-tile partial BatchNorm statistics (sum, sum of squares).
    y = jnp.dot(a_ref[...], b_ref[...], preferred_element_type=jnp.float32)
    o_ref[...] = y
    s1 = jnp.sum(y, axis=0, keepdims=True)          # (1, C)
    s2 = jnp.sum(y * y, axis=0, keepdims=True)      # (1, C)
    s1_ref[...] = s1[None]                          # (1, 1, C)
    s2_ref[...] = s2[None]


def _bn_lrelu_kernel(x_ref, scale_ref, shift_ref, o_ref):
    # Fused BatchNorm scale/shift + LeakyReLU(0.2), lane-dense channels.
    y = x_ref[...] * scale_ref[...] + shift_ref[...]
    o_ref[...] = jnp.where(y >= 0.0, y, NEG_SLOPE * y)


# --------------------------------------------------------------------------
# Pallas wrappers
# --------------------------------------------------------------------------
def conv_matmul(a, b, *, fuse_lrelu=False, with_stats=False, tm_max=256):
    """a: (M, K) f32 patches, b: (K, N) f32 weights, N a multiple of 128.

    Returns y[:M] (and per-channel sum / sum-of-squares over rows if requested).
    """
    M, K = a.shape
    K2, N = b.shape
    assert K == K2 and N % LANE == 0
    tm = _pick_row_tile(M, tm_max)
    Mp = _round_up(M, tm)
    n_blocks = Mp // tm
    a_pad = jnp.pad(a, ((0, Mp - M), (0, 0))) if Mp != M else a

    in_specs = [
        pl.BlockSpec((tm, K), lambda i: (i, 0)),
        pl.BlockSpec((K, N), lambda i: (0, 0)),      # weights resident in VMEM
    ]
    cparams = pltpu.CompilerParams(dimension_semantics=("parallel",))

    if with_stats:
        y, s1, s2 = pl.pallas_call(
            _mm_stats_kernel,
            out_shape=(
                jax.ShapeDtypeStruct((Mp, N), jnp.float32),
                jax.ShapeDtypeStruct((n_blocks, 1, N), jnp.float32),
                jax.ShapeDtypeStruct((n_blocks, 1, N), jnp.float32),
            ),
            grid=(n_blocks,),
            in_specs=in_specs,
            out_specs=(
                pl.BlockSpec((tm, N), lambda i: (i, 0)),
                pl.BlockSpec((1, 1, N), lambda i: (i, 0, 0)),
                pl.BlockSpec((1, 1, N), lambda i: (i, 0, 0)),
            ),
            compiler_params=cparams,
        )(a_pad, b)
        # Zero-padded rows contribute nothing; reduce the tiny per-tile partials.
        return y[:M], jnp.sum(s1, axis=(0, 1)), jnp.sum(s2, axis=(0, 1))

    kernel = _mm_lrelu_kernel if fuse_lrelu else _mm_kernel
    y = pl.pallas_call(
        kernel,
        out_shape=jax.ShapeDtypeStruct((Mp, N), jnp.float32),
        grid=(n_blocks,),
        in_specs=in_specs,
        out_specs=pl.BlockSpec((tm, N), lambda i: (i, 0)),
        compiler_params=cparams,
    )(a_pad, b)
    return y[:M]


def bn_lrelu(x2d, scale, shift, tm_max=512):
    """Fused (x * scale + shift) -> LeakyReLU(0.2), tiled over rows."""
    M, C = x2d.shape
    tm = _pick_row_tile(M, tm_max)
    Mp = _round_up(M, tm)
    xp = jnp.pad(x2d, ((0, Mp - M), (0, 0))) if Mp != M else x2d
    out = pl.pallas_call(
        _bn_lrelu_kernel,
        out_shape=jax.ShapeDtypeStruct((Mp, C), jnp.float32),
        grid=(Mp // tm,),
        in_specs=[
            pl.BlockSpec((tm, C), lambda i: (i, 0)),
            pl.BlockSpec((1, C), lambda i: (0, 0)),
            pl.BlockSpec((1, C), lambda i: (0, 0)),
        ],
        out_specs=pl.BlockSpec((tm, C), lambda i: (i, 0)),
        compiler_params=pltpu.CompilerParams(dimension_semantics=("parallel",)),
    )(xp, scale.reshape(1, C), shift.reshape(1, C))
    return out[:M]


# --------------------------------------------------------------------------
# Glue: im2col + conv layer
# --------------------------------------------------------------------------
def im2col(x_nhwc, k, stride, pad):
    N, H, W, C = x_nhwc.shape
    xp = jnp.pad(x_nhwc, ((0, 0), (pad, pad), (pad, pad), (0, 0))) if pad else x_nhwc
    Ho = (H + 2 * pad - k) // stride + 1
    Wo = (W + 2 * pad - k) // stride + 1
    cols = []
    for ki in range(k):
        for kj in range(k):
            cols.append(xp[:, ki:ki + stride * Ho:stride, kj:kj + stride * Wo:stride, :])
    # flattened patch ordering: (kh, kw, c) -- matches weight reshape below.
    patches = jnp.concatenate(cols, axis=-1)
    return patches.reshape(N * Ho * Wo, k * k * C), Ho, Wo


def conv2d_pallas(x_nhwc, w_oihw, stride, pad, *, fuse_lrelu=False, with_stats=False):
    Cout, Cin, Kh, Kw = w_oihw.shape
    N, H, W, C = x_nhwc.shape
    assert C >= Cin                               # C may carry zero lane-padding
    cout_pad = _round_up(Cout, LANE)
    patches, Ho, Wo = im2col(x_nhwc, Kh, stride, pad)
    # (kh, kw, cin) ordering; zero rows for padded-in channels, zero columns
    # for padded-out channels, so results are identical to the unpadded conv.
    w = jnp.transpose(w_oihw, (2, 3, 1, 0))                       # (Kh,Kw,Cin,Cout)
    w = jnp.pad(w, ((0, 0), (0, 0), (0, C - Cin), (0, cout_pad - Cout)))
    w_mat = w.reshape(Kh * Kw * C, cout_pad)
    res = conv_matmul(patches, w_mat, fuse_lrelu=fuse_lrelu, with_stats=with_stats)
    if with_stats:
        y, s1, s2 = res
        return y.reshape(N, Ho, Wo, cout_pad), s1, s2
    return res.reshape(N, Ho, Wo, cout_pad)


# --------------------------------------------------------------------------
# Parameters + forward pass
# --------------------------------------------------------------------------
def init_params(key, n_channels, output_size, ngf, n_layers):
    convs, bns = [], []
    c_in, c_out = n_channels, ngf
    key, sub = jax.random.split(key)
    convs.append(0.02 * jax.random.normal(sub, (c_out, c_in, 4, 4), jnp.float32))
    for _ in range(1, n_layers - 1):
        c_in, c_out = c_out, c_out * 2
        key, sub = jax.random.split(key)
        convs.append(0.02 * jax.random.normal(sub, (c_out, c_in, 4, 4), jnp.float32))
        # PyTorch BatchNorm2d default init: weight=1, bias=0.
        bns.append((jnp.ones((c_out,), jnp.float32), jnp.zeros((c_out,), jnp.float32)))
    key, sub = jax.random.split(key)
    convs.append(0.02 * jax.random.normal(sub, (output_size, c_out, 4, 4), jnp.float32))
    return {"convs": convs, "bn": bns}


def image_encoder_forward(x_nchw, params, n_layers):
    x = jnp.transpose(x_nchw, (0, 2, 3, 1)).astype(jnp.float32)   # NCHW -> NHWC

    # Layer 0: Conv(4, s=2, p=1, no bias) with fused LeakyReLU(0.2) epilogue.
    x = conv2d_pallas(x, params["convs"][0], stride=2, pad=1, fuse_lrelu=True)

    # Middle layers: Conv + BatchNorm (training-mode batch stats) + LeakyReLU.
    for i in range(1, n_layers - 1):
        y, s1, s2 = conv2d_pallas(x, params["convs"][i], stride=2, pad=1,
                                  with_stats=True)
        N, H, W, C = y.shape
        M = N * H * W
        mean = s1 / M
        var = s2 / M - mean * mean        # f32 accumulators; fine at these scales
        gamma, beta = params["bn"][i - 1]
        g = jnp.pad(gamma, (0, C - gamma.shape[0]), constant_values=1.0)
        b = jnp.pad(beta, (0, C - beta.shape[0]))
        scale = g * lax.rsqrt(var + EPS)
        shift = b - mean * scale
        x = bn_lrelu(y.reshape(M, C), scale, shift).reshape(N, H, W, C)

    # Final layer: Conv(k=4, s=1, p=0, no bias) -> 1x1 spatial, squeeze.
    out_c = params["convs"][-1].shape[0]
    y = conv2d_pallas(x, params["convs"][-1], stride=1, pad=0)
    return y.reshape(y.shape[0], y.shape[3])[:, :out_c]            # (N, output_size)


# --------------------------------------------------------------------------
# Pure-JAX reference (mirrors the PyTorch module) for validation
# --------------------------------------------------------------------------
def ref_forward(x_nchw, params, n_layers):
    dn = ("NCHW", "OIHW", "NCHW")
    x = lax.conv_general_dilated(x_nchw, params["convs"][0], (2, 2),
                                 [(1, 1), (1, 1)], dimension_numbers=dn)
    x = jnp.where(x >= 0, x, NEG_SLOPE * x)
    for i in range(1, n_layers - 1):
        x = lax.conv_general_dilated(x, params["convs"][i], (2, 2),
                                     [(1, 1), (1, 1)], dimension_numbers=dn)
        m = jnp.mean(x, axis=(0, 2, 3), keepdims=True)
        v = jnp.mean((x - m) ** 2, axis=(0, 2, 3), keepdims=True)
        gamma, beta = params["bn"][i - 1]
        x = (x - m) / jnp.sqrt(v + EPS) * gamma[None, :, None, None] + beta[None, :, None, None]
        x = jnp.where(x >= 0, x, NEG_SLOPE * x)
    x = lax.conv_general_dilated(x, params["convs"][-1], (1, 1),
                                 [(0, 0), (0, 0)], dimension_numbers=dn)
    return x.squeeze(3).squeeze(2)


# --------------------------------------------------------------------------
if __name__ == "__main__":
    # Small config consistent with the module: 16x16 input, 3-layer encoder
    # (16 -> 8 -> 4 -> 1 spatial), so the final squeeze yields (N, output_size).
    n_channels, output_size, ngf, n_layers = 4, 32, 8, 3
    batch, H, W = 2, 16, 16

    key = jax.random.PRNGKey(0)
    key, kx, kp = jax.random.split(key, 3)
    x = jax.random.normal(kx, (batch, n_channels, H, W), jnp.float32)
    params = init_params(kp, n_channels, output_size, ngf, n_layers)

    out = image_encoder_forward(x, params, n_layers)
    out = jax.block_until_ready(out)
    assert out.shape == (batch, output_size), out.shape

    ref = jax.block_until_ready(ref_forward(x, params, n_layers))
    np.testing.assert_allclose(np.asarray(out), np.asarray(ref), rtol=2e-4, atol=1e-4)

    print("KERNEL_OK")
</pallas_src>

<mosaic_0001>
module attributes {stable_mosaic.version = 11 : i64} {
  func.func @_mm_lrelu_kernel(%arg0: i32, %arg1: memref<64x64xf32, #tpu.memory_space<vmem>>, %arg2: memref<64x128xf32, #tpu.memory_space<vmem>>, %arg3: memref<64x128xf32, #tpu.memory_space<vmem>>) attributes {dimension_semantics = [#tpu.dimension_semantics<parallel>], iteration_bounds = array<i64: 2>, scalar_prefetch = 0 : i64, scratch_operands = 0 : i64, tpu.core_type = #tpu.core_type<tc>, window_params = [{transform_indices = @transform_0, window_bounds = array<i64: 64, 64>}, {pipeline_mode = #tpu.pipeline_mode<synchronous>, transform_indices = @transform_1, window_bounds = array<i64: 64, 128>}, {transform_indices = @transform_2, window_bounds = array<i64: 64, 128>}]} {
    %c0 = arith.constant 0 : index
    %c0_0 = arith.constant 0 : index
    %0 = vector.load %arg1[%c0, %c0_0] : memref<64x64xf32, #tpu.memory_space<vmem>>, vector<64x64xf32>
    %c0_1 = arith.constant 0 : index
    %c0_2 = arith.constant 0 : index
    %1 = vector.load %arg2[%c0_1, %c0_2] : memref<64x128xf32, #tpu.memory_space<vmem>>, vector<64x128xf32>
    %cst = arith.constant dense<0.000000e+00> : vector<64x128xf32>
    %2 = tpu.matmul %0, %1, %cst {dimension_numbers = #tpu.dot_dimension_numbers<[1], [0], [0], [1], [0, 0, 1, 1], [], []>} : vector<64x64xf32>, vector<64x128xf32>, vector<64x128xf32> -> vector<64x128xf32>
    %cst_3 = arith.constant 0.000000e+00 : f32
    %3 = vector.broadcast %cst_3 : f32 to vector<64x128xf32>
    %4 = arith.cmpf oge, %2, %3 : vector<64x128xf32>
    %cst_4 = arith.constant 2.000000e-01 : f32
    %5 = vector.broadcast %cst_4 : f32 to vector<64x128xf32>
    %6 = arith.mulf %5, %2 : vector<64x128xf32>
    %7 = arith.select %4, %2, %6 : vector<64x128xi1>, vector<64x128xf32>
    %c0_5 = arith.constant 0 : index
    %c0_6 = arith.constant 0 : index
    %8 = vector.load %arg3[%c0_5, %c0_6] : memref<64x128xf32, #tpu.memory_space<vmem>>, vector<64x128xf32>
    tpu.vector_store %arg3[%c0_5, %c0_6], %7 {strides = array<i32>} : memref<64x128xf32, #tpu.memory_space<vmem>>, vector<64x128xf32>,
    return
  }
  func.func @transform_0(%arg0: i32) -> (i32, i32) {
    %c0_i32 = arith.constant 0 : i32
    %c0_i32_0 = arith.constant 0 : i32
    return %arg0, %c0_i32 : i32, i32
  }
  func.func @transform_1(%arg0: i32) -> (i32, i32) {
    %c0_i32 = arith.constant 0 : i32
    %c0_i32_0 = arith.constant 0 : i32
    %c0_i32_1 = arith.constant 0 : i32
    return %c0_i32, %c0_i32_0 : i32, i32
  }
  func.func @transform_2(%arg0: i32) -> (i32, i32) {
    %c0_i32 = arith.constant 0 : i32
    %c0_i32_0 = arith.constant 0 : i32
    return %arg0, %c0_i32 : i32, i32
  }
}

</mosaic_0001>

<bundles_post_ra>
// kernel: tpu_custom_call.1
= control target key start
LH: loop header
LB: loop body
LE: loop exit
PB: predicated region body
PF: predicated region fallthrough
CT: control target
= control target key end

     0   :  { %7 = vsyncpa [#allocation3], 0  ;;  %s749_s0 = inlined_call_operand.vmem [shape: f32[128,64], index: 0, kind: input, shape index: {}]   ;;  %s750_s1 = inlined_call_operand.vmem [shape: f32[64,128], index: 1, kind: input, shape index: {}]   ;;  %s751_s2 = inlined_call_operand.hbm [shape: f32[128,128], index: 2, kind: output, shape index: {}]  }
   0x1   :  { %9 = vsyncpa [#allocation3 + $0x1], 0  ;;  %s601_s9 = smov 0   ;;  %s603_s10 = smov 0  }
   0x2   :  { %s605_s11 = smov 0   ;;  %s607_s12 = smov 0  }
   0x3 LB: > { %s622_s13 = sadd.s32 4294967295, %s581_s12   ;;  %s399_s14 = sadd.s32 4294967294, %s581_s12   ;;  %s581_s12 = sphi %s607_s12, %s757_s12   ;;  %s577_s11 = sphi %s605_s11, %s756_s11   ;;  %s573_s10 = sphi %s603_s10, %s755_s10   ;;  %s569_s9 = sphi %s601_s9, %s754_s9  }
   0x4   : > { %s626_s15 = sadd.s32 1, %s581_s12   ;;  %s69_s16 = sadd.s32 1, %s577_s11 }
   0x5   : > { %s66_s17 = ssub.s32 %s581_s12, %s626_s15  ;;  %p79_p0 = scmp.ne.s32.totalorder %s577_s11, %s573_s10 }
   0x6   : > { %p67_p1 = scmp.eq.s32.totalorder %s66_s17, 0  ;;  %p80_p2 = scmp.eq.s32.totalorder %s622_s13, 1 }
   0x7   : > { %p85_p3 = scmp.ne.s32.totalorder %s573_s10, %s569_s9  ;;  %p86_p4 = scmp.eq.s32.totalorder %s399_s14, 1 }
   0x8   : > { %s637_s18 = scalar_select %p67_p1, %s577_s11, %s69_s16  }
   0x9   : > { %p639_p5 = por %p80_p2, %p79_p0  ;;  %p643_p6 = por %p86_p4, %p85_p3 }
   0xa   : > { %p402_p7 = scmp.ge.s32.totalorder %s581_s12, 1  ;;  %p116_p8 = scmp.lt.s32.totalorder %s581_s12, 3 }
   0xc   : > { %p117_p9 = pnand %p402_p7, %p116_p8 }
   0xd   : > { %s404_s25 = sshll.u32 (!%p117_p9), %s622_s13, 3  ;;  %s135_s23 = sand.u32 (!%p117_p9), 1, %s573_s10  }
   0xe   : > { %120 = sbr.rel (%p117_p9) target bundleno = 254 (0xfe), region = 28  ;;  %p139_p10 = scmp.lt.s32.totalorder (!%p117_p9), %s404_s25, 15 }
   0xf   : > { %s403_s24 = sshll.u32 (!%p117_p9), %s135_s23, 6  ;;  %s419_s26 = sshll.u32 (!%p117_p9), %s622_s13, 10 }
  0x10   : > { %s700_s29 = scalar_lea.hbm (!%p117_p9), %s751_s2, %s419_s26  ;;  %s709_s30 = scalar_lea.sflag (!%p117_p9), [#allocation3], %s135_s23 }
  0x11   : > { %s583_s4 = smov (!%p117_p9), [#allocation2]  }
  0x12   : > { %s525_s5 = sshll.u32 (!%p117_p9), %s583_s4, 4  ;;  %s526_s5 = int_to_ptr.vmem [resolvable:$false] %s525_s5 }
  0x13   : > { %v160_v0 = vld [vmem:[%s750_s1 + $0x38] sm:$0xff]  ;;  %v159_v1 = vld [vmem:[%s750_s1 + $0x30] sm:$0xff]  ;;  %v158_v2 = vld [vmem:[%s750_s1 + $0x28] sm:$0xff]  ;;  %s759_s25 = smov (!%p139_p10, %s404_s25), 15  ;;  %vm161_vm0 = vcmask 523264  }
  0x14   : > { %436 = vmatprep.subr.mxu0 %v160_v0  ;;  %464 = vmatprep.subr.mxu1 %v160_v0  ;;  %v157_v3 = vld [vmem:[%s750_s1 + $0x20] sm:$0xff]  ;;  %v156_v4 = vld [vmem:[%s750_s1 + $0x18] sm:$0xff]  ;;  %v155_v5 = vld [vmem:[%s750_s1 + $0x10] sm:$0xff]  ;;  %s405_s6 = sshll.u32 %s759_s25, 3  ;;  %s688_s25 = scalar_lea.vmem [#allocation2], %s403_s24 }
  0x15   : > { %437 = vmatpush3.msra.mxu0 %v160_v0  ;;  %472 = vmatpush3.msra.mxu1 %v160_v0  ;;  %v154_v6 = vld [vmem:[%s750_s1 + $0x8] sm:$0xff]  ;;  %s142_s17 = scalar_lea.vmem %s749_s0, %s405_s6  ;;  %v153_v7 = vld [vmem:[%s750_s1] sm:$0xff]  ;;  %s337_s27 = sshll.u32 %s688_s25, 4  ;;  %s702_s27 = int_to_ptr.vmem [resolvable:$true] %s337_s27 }
  0x16   : > { %438 = vmatprep.subr.mxu0 %v159_v1  ;;  %465 = vmatprep.subr.mxu1 %v159_v1  ;;  %v145_v8 = vld [vmem:[%s142_s17] sm:$0xff]  ;;  %v146_v10 = vld [vmem:[%s142_s17 + $0x8] sm:$0xff]  ;;  %v147_v12 = vld [vmem:[%s142_s17 + $0x10] sm:$0xff]  ;;  %s521_s3 = scalar_lea.vmem %s702_s27, 1024  ;;  %s527_s6 = scalar_lea.vmem %s526_s5, 2048 }
  0x17   : > { %439 = vmatpush3.msra.mxu0 %v159_v1  ;;  %473 = vmatpush3.msra.mxu1 %v159_v1  ;;  %v149_v9 = vld [vmem:[%s142_s17 + $0x20] sm:$0xff]  ;;  %v150_v11 = vld [vmem:[%s142_s17 + $0x28] sm:$0xff]  ;;  %v151_v13 = vld [vmem:[%s142_s17 + $0x30] sm:$0xff]  ;;  %p522_p11 = scmp.ne.s32.totalorder %s702_s27, %s521_s3  ;;  %p528_p0 = scmp.lt.s32.totalorder %s702_s27, %s526_s5 }
  0x18   : > { %440 = vmatprep.subr.mxu0 %v158_v2  ;;  %466 = vmatprep.subr.mxu1 %v158_v2  ;;  %v148_v14 = vld [vmem:[%s142_s17 + $0x18] sm:$0xff]  ;;  %p529_p1 = scmp.lt.s32.totalorder %s527_s6, %s521_s3 }
  0x19   : > { %441 = vmatpush3.msra.mxu0 %v158_v2  ;;  %474 = vmatpush3.msra.mxu1 %v158_v2  ;;  %v152_v15 = vld [vmem:[%s142_s17 + $0x38] sm:$0xff]  ;;  %p523_p12 = pnand %p522_p11, %p639_p5 }
  0x1a   : > { %442 = vmatprep.subr.mxu0 %v157_v3  ;;  %467 = vmatprep.subr.mxu1 %v157_v3  ;;  %p530_p2 = por %p529_p1, %p528_p0 }
  0x1b   : > { %443 = vmatpush3.msra.mxu0 %v157_v3  ;;  %475 = vmatpush3.msra.mxu1 %v157_v3  ;;  %p524_p13 = pneg %p523_p12 }
  0x1c   : > { %444 = vmatprep.subr.mxu0 %v156_v4  ;;  %468 = vmatprep.subr.mxu1 %v156_v4 }
  0x1d   : > { %445 = vmatpush3.msra.mxu0 %v156_v4  ;;  %476 = vmatpush3.msra.mxu1 %v156_v4  ;;  %p531_p3 = pnand %p530_p2, %p524_p13 }
  0x1e   : > { %446 = vmatprep.subr.mxu0 %v155_v5  ;;  %469 = vmatprep.subr.mxu1 %v155_v5 }
  0x1f   : > { %447 = vmatpush3.msra.mxu0 %v155_v5  ;;  %477 = vmatpush3.msra.mxu1 %v155_v5 }
  0x20   : > { %448 = vmatprep.subr.mxu0 %v154_v6  ;;  %470 = vmatprep.subr.mxu1 %v154_v6 }
  0x21   : > { %449 = vmatpush3.msra.mxu0 %v154_v6  ;;  %478 = vmatpush3.msra.mxu1 %v154_v6 }
  0x22   : > { %450 = vmatprep.subr.mxu0 %v153_v7  ;;  %471 = vmatprep.subr.mxu1 %v153_v7 }
  0x23   : > { %451 = vmatpush3.msra.mxu0 %v153_v7  ;;  %479 = vmatpush3.msra.mxu1 %v153_v7 }
  0x24   : > { %452 = vmatprep.mubr.msk.f32.mxu0 %vm161_vm0, %v145_v8  ;;  %458 = vmatprep.mubr.msk.f32.mxu1 %vm161_vm0, %v149_v9 }
  0x25   : > { %453 = vmatmul.mubr.msk.f32.vlgmr.msra.gmra.mxu0 %vm161_vm0, %v146_v10  ;;  %459 = vmatmul.mubr.msk.f32.vlgmr.msra.gmra.mxu1 %vm161_vm0, %v150_v11 }
  0x26   : > { %455 = vmatprep.mubr.msk.f32.mxu0 %vm161_vm0, %v147_v12  ;;  %461 = vmatprep.mubr.msk.f32.mxu1 %vm161_vm0, %v151_v13 }
  0x29   : > { %456 = vmatmul.mubr.msk.f32.gmra.mxu0 %vm161_vm0, %v148_v14  ;;  %462 = vmatmul.mubr.msk.f32.gmra.mxu1 %vm161_vm0, %v152_v15 }
  0xe5   : > { %v454_v16 = vpop.f32.mrf.mxu0  ;;  %v460_v17 = vpop.f32.mrf.mxu1 }
  0xe6   : > { %vm292_vm1 = vcmp.ge.f32.partialorder %v454_v16, 0.0  ;;  %v300_v18 = vmul.f32 0.2, %v454_v16  ;;  %vm296_vm2 = vcmp.ge.f32.partialorder %v460_v17, 0.0  ;;  %v304_v19 = vmul.f32 0.2, %v460_v17 }
  0xe7   : > { %v252_v20 = vpop.f32.mrf.mxu0  ;;  %v272_v21 = vpop.f32.mrf.mxu1 }
  0xe8   : > { %v308_v22 = vsel %vm292_vm1, %v454_v16, %v300_v18  ;;  %v312_v23 = vsel %vm296_vm2, %v460_v17, %v304_v19  ;;  %vm291_vm3 = vcmp.ge.f32.partialorder %v252_v20, 0.0  ;;  %v299_v24 = vmul.f32 0.2, %v252_v20 }
  0xe9   : > { %316 = vst [vmem:[%s688_s25 + $0x8] sm:$0xff] %v308_v22  ;;  %320 = vst [vmem:[%s688_s25 + $0x28] sm:$0xff] %v312_v23  ;;  %vm295_vm4 = vcmp.ge.f32.partialorder %v272_v21, 0.0  ;;  %v303_v25 = vmul.f32 0.2, %v272_v21  ;;  %v457_v26 = vpop.f32.mrf.mxu0  ;;  %v463_v27 = vpop.f32.mrf.mxu1 }
  0xea   : > { %v307_v28 = vsel %vm291_vm3, %v252_v20, %v299_v24  ;;  %vm294_vm5 = vcmp.ge.f32.partialorder %v457_v26, 0.0  ;;  %v302_v29 = vmul.f32 0.2, %v457_v26  ;;  %vm298_vm6 = vcmp.ge.f32.partialorder %v463_v27, 0.0 }
  0xeb   : > { %315 = vst [vmem:[%s688_s25] sm:$0xff] %v307_v28  ;;  %v311_v30 = vsel %vm295_vm4, %v272_v21, %v303_v25  ;;  %v306_v31 = vmul.f32 0.2, %v463_v27  ;;  %v262_v32 = vpop.f32.mrf.mxu0  ;;  %v282_v33 = vpop.f32.mrf.mxu1 }
  0xec   : > { %319 = vst [vmem:[%s688_s25 + $0x20] sm:$0xff] %v311_v30  ;;  %v310_v34 = vsel %vm294_vm5, %v457_v26, %v302_v29  ;;  %vm293_vm7 = vcmp.ge.f32.partialorder %v262_v32, 0.0  ;;  %v301_v35 = vmul.f32 0.2, %v262_v32  ;;  %vm297_vm8 = vcmp.ge.f32.partialorder %v282_v33, 0.0 }
  0xed   : > { %318 = vst [vmem:[%s688_s25 + $0x18] sm:$0xff] %v310_v34  ;;  %v314_v36 = vsel %vm298_vm6, %v463_v27, %v306_v31  ;;  %v305_v37 = vmul.f32 0.2, %v282_v33 }
  0xee   : > { %322 = vst [vmem:[%s688_s25 + $0x38] sm:$0xff] %v314_v36  ;;  %v309_v38 = vsel %vm293_vm7, %v262_v32, %v301_v35 }
  0xef   : > { %317 = vst [vmem:[%s688_s25 + $0x10] sm:$0xff] %v309_v38  ;;  %v313_v39 = vsel %vm297_vm8, %v282_v33, %v305_v37 }
  0xf0   : > { %321 = vst [vmem:[%s688_s25 + $0x30] sm:$0xff] %v313_v39 }
  0xf1   : > { %534 = shalt.err (!%p531_p3)
}
  0xf2   : > { %s535_s7 = scalar_lea.hbm %s700_s29, 1024  ;;  %s539_s16 = scalar_lea.hbm %s751_s2, 2048 }
  0xf3   : > { %p536_p4 = scmp.ne.s32.totalorder %s700_s29, %s535_s7  ;;  %p540_p9 = scmp.lt.s32.totalorder %s700_s29, %s751_s2 }
  0xf4   : > { %p541_p10 = scmp.lt.s32.totalorder %s539_s16, %s535_s7 }
  0xf5   : > { %p537_p7 = pnand %p536_p4, %p639_p5 }
  0xf6   : > { %p542_p11 = por %p541_p10, %p540_p9 }
  0xf7   : > { %p538_p8 = pneg %p537_p7 }
  0xf9   : > { %p543_p12 = pnand %p542_p11, %p538_p8 }
  0xfb   : > { %546 = shalt.err (!%p543_p12)
}
  0xfc   : > { %s584_s22 = smov 128   ;;  %s585_s23 = smov 8  }
  0xfd   : > { %480 = dma.vmem_to_hbm [thread:$0]  (%p639_p5), %s702_s27, 1024, %s700_s29, %s709_s30, %s584_s22, %s584_s22, %s585_s23  }
  0xfe PF: > { %p486_p13 = scmp.ge.s32.totalorder %s581_s12, 2  ;;  %s352_s24 = sand.u32 1, %s569_s9  }
  0xff   : > { %s353_s25 = scalar_lea.sflag [#allocation3], %s352_s24 }
 0x100   : > { %p483_p0 = pnand %p486_p13, %p643_p6 }
 0x102   : > { %p484_p1 = pneg %p483_p0 }
 0x104   : > { %564 = dma.done.wait (%p484_p1), %s353_s25, 1024  }
 0x105   : > { %566 = vsyncadd (%p484_p1), %s353_s25, 4294966272  ;;  %p12_p2 = scmp.ge.s32.totalorder %s626_s15, 4   ;;  %s754_s9 = smov %s573_s10 }
 0x106   : > { %s755_s10 = smov %s577_s11  ;;  %s756_s11 = smov %s637_s18 }
 0x107   : > { %s757_s12 = smov %s626_s15  ;;  %14 = sbr.rel (!%p12_p2) target bundleno = 3 (0x3), region = 63 }
 0x10c   :  { %358 = vsyncpa [#allocation3], 1 }
 0x10d   :  { %360 = vsyncpa [#allocation3 + $0x1], 1 }

</bundles_post_ra>
